<compile_context>
chip_gen: v5e
topology: v5e:2x2
jax: 0.10.0
libtpu: 0.0.40
codegen_flags: <defaults>
</compile_context>

<pallas_src>
import jax
import jax.numpy as jnp
from jax import lax
from jax.experimental import pallas as pl
from jax.experimental.pallas import tpu as pltpu


# ------------------------------ kernel ------------------------------------ #

def _conv3x3_dense(y, t_ref, b_ref):
    """3x3 'same' conv in lane-dense layout.

    y:      (bt, H, W*Cin)  f32 value   (rows on sublanes, (w, ci) on lanes)
    t_ref:  (3, W*Cin, W*Cout)          banded block-Toeplitz weight (kh major)
    b_ref:  (1, W*Cout)                 pre-tiled bias
    returns (bt, H, W*Cout) f32
    """
    bt, H, WCi = y.shape
    WCo = t_ref.shape[-1]
    # dy halo: two zero rows only — the width zero-padding is inside t_ref.
    z = jnp.zeros((bt, 1, WCi), jnp.float32)
    yp = jnp.concatenate([z, y, z], axis=1)                  # (bt, H+2, W*Cin)
    acc = b_ref[...]                                         # (1, W*Cout)
    for kh in range(3):
        lhs = yp[:, kh:kh + H, :].reshape(bt * H, WCi)       # batch folded in M
        acc = acc + lax.dot_general(
            lhs, t_ref[kh],
            dimension_numbers=(((1,), (0,)), ((), ())),
            preferred_element_type=jnp.float32)              # (bt*H, W*Cout)
    return acc.reshape(bt, H, WCo)


def _conv_decoder_block_kernel(x_ref, skip_ref,
                               tp_ref, bp_ref, t1_ref, b1_ref, t2_ref, b2_ref,
                               out_ref):
    """bt images per grid step; all refs lane-dense (last dim = W*C)."""
    y0 = _conv3x3_dense(x_ref[...], tp_ref, bp_ref)              # proj
    y1 = jnp.maximum(_conv3x3_dense(y0, t1_ref, b1_ref), 0.0)    # ResBlock conv1
    y2 = _conv3x3_dense(y1, t2_ref, b2_ref)                      # ResBlock conv2
    out_ref[...] = (y0 + y2 + skip_ref[...]).astype(out_ref.dtype)


# ------------------------------ wrapper ------------------------------------ #

def _fold_toeplitz(w_hwio, W):
    """(3, 3, Ci, Co) HWIO conv weight -> (3, W*Ci, W*Co) banded block-Toeplitz.

    t[kh, wp*Ci + ci, w*Co + co] = w_hwio[kh, wp - w + 1, ci, co]
    for wp in {w-1, w, w+1} ∩ [0, W); zero elsewhere.  The kw taps and the
    width-direction 'same' padding are folded into the contraction dim.
    """
    _, _, Ci, Co = w_hwio.shape
    w32 = w_hwio.astype(jnp.float32)
    t = jnp.zeros((3, W * Ci, W * Co), jnp.float32)
    for w in range(W):
        for kw in range(3):
            wp = w + kw - 1
            if 0 <= wp < W:
                t = t.at[:, wp * Ci:(wp + 1) * Ci,
                         w * Co:(w + 1) * Co].set(w32[:, kw])
    return t


def _pick_images_per_step(B):
    """Pack several images per grid step (amortize the ~0.35us/step overhead
    and enlarge DMAs) while keeping >= 2 grid steps so both of v7x's
    TensorCores stay busy (v5e/v6e have a single TC so this is harmless)."""
    target = max(1, B // 2)
    for bt in range(target, 0, -1):
        if B % bt == 0:
            return bt
    return 1


@jax.jit
def conv_decoder_block(x_nchw, skip_nchw, params):
    """x_nchw: (B, Cin, H, W), skip_nchw: (B, Cout, H, W). Returns NCHW."""
    wp, bp, w1, b1, w2, b2 = params
    B, Cin, H, W = x_nchw.shape
    Cout = wp.shape[-1]

    # glue: NCHW -> NHWC -> lane-dense (B, H, W*C).  (In an NHWC end-to-end
    # model these transposes disappear; the reshape itself is free.)
    x = jnp.transpose(x_nchw, (0, 2, 3, 1)).reshape(B, H, W * Cin)
    x = x.astype(jnp.float32)
    skip = jnp.transpose(skip_nchw, (0, 2, 3, 1)).reshape(B, H, W * Cout)
    skip = skip.astype(jnp.float32)

    # Fold kw taps + width padding into banded block-Toeplitz weights, and
    # tile the biases to the lane-dense (1, W*Cout) layout.
    tp = _fold_toeplitz(wp, W)                       # (3, W*Cin,  W*Cout)
    t1 = _fold_toeplitz(w1, W)                       # (3, W*Cout, W*Cout)
    t2 = _fold_toeplitz(w2, W)
    bp_d = jnp.tile(bp.astype(jnp.float32), W).reshape(1, W * Cout)
    b1_d = jnp.tile(b1.astype(jnp.float32), W).reshape(1, W * Cout)
    b2_d = jnp.tile(b2.astype(jnp.float32), W).reshape(1, W * Cout)

    bt = _pick_images_per_step(B)
    grid = (B // bt,)

    full = lambda s: pl.BlockSpec(s, lambda b: (0,) * len(s))

    out_dense = pl.pallas_call(
        _conv_decoder_block_kernel,
        out_shape=jax.ShapeDtypeStruct((B, H, W * Cout), jnp.float32),
        grid_spec=pltpu.PrefetchScalarGridSpec(
            num_scalar_prefetch=0,
            grid=grid,
            in_specs=[
                pl.BlockSpec((bt, H, W * Cin), lambda b: (b, 0, 0)),   # x
                pl.BlockSpec((bt, H, W * Cout), lambda b: (b, 0, 0)),  # skip
                full((3, W * Cin, W * Cout)),    # proj  weight (Toeplitz)
                full((1, W * Cout)),             # proj  bias
                full((3, W * Cout, W * Cout)),   # conv1 weight
                full((1, W * Cout)),             # conv1 bias
                full((3, W * Cout, W * Cout)),   # conv2 weight
                full((1, W * Cout)),             # conv2 bias
            ],
            out_specs=pl.BlockSpec((bt, H, W * Cout), lambda b: (b, 0, 0)),
        ),
        compiler_params=pltpu.CompilerParams(
            dimension_semantics=("parallel",)),
    )(x, skip, tp, bp_d, t1, b1_d, t2, b2_d)

    out = out_dense.reshape(B, H, W, Cout)
    return jnp.transpose(out, (0, 3, 1, 2))


# ------------------------------ reference ---------------------------------- #

def _ref_conv3x3(x_nhwc, w_hwio, b):
    y = lax.conv_general_dilated(
        x_nhwc, w_hwio, window_strides=(1, 1), padding="SAME",
        dimension_numbers=("NHWC", "HWIO", "NHWC"))
    return y + b[None, None, None, :]


def _ref_block(x_nchw, skip_nchw, params):
    wp, bp, w1, b1, w2, b2 = params
    x = jnp.transpose(x_nchw, (0, 2, 3, 1)).astype(jnp.float32)
    skip = jnp.transpose(skip_nchw, (0, 2, 3, 1)).astype(jnp.float32)
    y0 = _ref_conv3x3(x, wp, bp)
    y1 = jnp.maximum(_ref_conv3x3(y0, w1, b1), 0.0)
    y2 = _ref_conv3x3(y1, w2, b2)
    out = y0 + y2 + skip
    return jnp.transpose(out, (0, 3, 1, 2))


if __name__ == "__main__":
    B, Cin, Cout, H, W = 2, 4, 8, 16, 16        # W * Cout = 128 (lane-dense)

    key = jax.random.PRNGKey(0)
    kx, ks, k0, k1, k2, kb0, kb1, kb2 = jax.random.split(key, 8)

    x = jax.random.normal(kx, (B, Cin, H, W), jnp.float32)
    skip = jax.random.normal(ks, (B, Cout, H, W), jnp.float32)

    # Deterministic parameter init (HWIO layout for kernel and reference).
    wp = 0.1 * jax.random.normal(k0, (3, 3, Cin, Cout), jnp.float32)
    w1 = 0.1 * jax.random.normal(k1, (3, 3, Cout, Cout), jnp.float32)
    w2 = 0.1 * jax.random.normal(k2, (3, 3, Cout, Cout), jnp.float32)
    bp = 0.1 * jax.random.normal(kb0, (Cout,), jnp.float32)
    b1 = 0.1 * jax.random.normal(kb1, (Cout,), jnp.float32)
    b2 = 0.1 * jax.random.normal(kb2, (Cout,), jnp.float32)
    params = (wp, bp, w1, b1, w2, b2)

    out = conv_decoder_block(x, skip, params)
    out = jax.block_until_ready(out)

    ref = _ref_block(x, skip, params)
    assert out.shape == (B, Cout, H, W)
    err = float(jnp.max(jnp.abs(out - ref)))
    assert err < 1e-4, f"max abs err {err}"

    print("KERNEL_OK")
</pallas_src>

<mosaic_0001>
module attributes {stable_mosaic.version = 11 : i64} {
  func.func @_conv_decoder_block_kernel(%arg0: i32, %arg1: memref<1x16x64xf32, #tpu.memory_space<vmem>>, %arg2: memref<1x16x128xf32, #tpu.memory_space<vmem>>, %arg3: memref<3x64x128xf32, #tpu.memory_space<vmem>>, %arg4: memref<1x128xf32, #tpu.memory_space<vmem>>, %arg5: memref<3x128x128xf32, #tpu.memory_space<vmem>>, %arg6: memref<1x128xf32, #tpu.memory_space<vmem>>, %arg7: memref<3x128x128xf32, #tpu.memory_space<vmem>>, %arg8: memref<1x128xf32, #tpu.memory_space<vmem>>, %arg9: memref<1x16x128xf32, #tpu.memory_space<vmem>>) attributes {dimension_semantics = [#tpu.dimension_semantics<parallel>], iteration_bounds = array<i64: 2>, scalar_prefetch = 0 : i64, scratch_operands = 0 : i64, tpu.core_type = #tpu.core_type<tc>, window_params = [{transform_indices = @transform_0, window_bounds = array<i64: 1, 16, 64>}, {transform_indices = @transform_1, window_bounds = array<i64: 1, 16, 128>}, {pipeline_mode = #tpu.pipeline_mode<synchronous>, transform_indices = @transform_2, window_bounds = array<i64: 3, 64, 128>}, {pipeline_mode = #tpu.pipeline_mode<synchronous>, transform_indices = @transform_3, window_bounds = array<i64: 1, 128>}, {pipeline_mode = #tpu.pipeline_mode<synchronous>, transform_indices = @transform_4, window_bounds = array<i64: 3, 128, 128>}, {pipeline_mode = #tpu.pipeline_mode<synchronous>, transform_indices = @transform_5, window_bounds = array<i64: 1, 128>}, {pipeline_mode = #tpu.pipeline_mode<synchronous>, transform_indices = @transform_6, window_bounds = array<i64: 3, 128, 128>}, {pipeline_mode = #tpu.pipeline_mode<synchronous>, transform_indices = @transform_7, window_bounds = array<i64: 1, 128>}, {transform_indices = @transform_8, window_bounds = array<i64: 1, 16, 128>}]} {
    %c0 = arith.constant 0 : index
    %c0_0 = arith.constant 0 : index
    %c0_1 = arith.constant 0 : index
    %0 = vector.load %arg1[%c0, %c0_0, %c0_1] : memref<1x16x64xf32, #tpu.memory_space<vmem>>, vector<1x16x64xf32>
    %cst = arith.constant 0.000000e+00 : f32
    %1 = vector.broadcast %cst : f32 to vector<1x1x64xf32>
    %2 = tpu.concatenate %1, %0, %1 in 1 : vector<1x1x64xf32>, vector<1x16x64xf32>, vector<1x1x64xf32> -> vector<1x18x64xf32>
    %c0_2 = arith.constant 0 : index
    %c0_3 = arith.constant 0 : index
    %3 = vector.load %arg4[%c0_2, %c0_3] : memref<1x128xf32, #tpu.memory_space<vmem>>, vector<1x128xf32>
    %4 = vector.extract_strided_slice %2 {offsets = [0, 0, 0], sizes = [1, 16, 64], strides = [1, 1, 1]} : vector<1x18x64xf32> to vector<1x16x64xf32>
    %5 = vector.shape_cast %4 : vector<1x16x64xf32> to vector<16x64xf32>
    %c0_4 = arith.constant 0 : index
    %c0_5 = arith.constant 0 : index
    %c0_6 = arith.constant 0 : index
    %6 = vector.load %arg3[%c0_4, %c0_5, %c0_6] : memref<3x64x128xf32, #tpu.memory_space<vmem>>, vector<1x64x128xf32>
    %7 = vector.shape_cast %6 : vector<1x64x128xf32> to vector<64x128xf32>
    %cst_7 = arith.constant dense<0.000000e+00> : vector<16x128xf32>
    %8 = tpu.matmul %5, %7, %cst_7 {dimension_numbers = #tpu.dot_dimension_numbers<[1], [0], [0], [1], [0, 0, 1, 1], [], []>} : vector<16x64xf32>, vector<64x128xf32>, vector<16x128xf32> -> vector<16x128xf32>
    %9 = vector.broadcast %3 : vector<1x128xf32> to vector<16x128xf32>
    %10 = arith.addf %9, %8 : vector<16x128xf32>
    %11 = vector.extract_strided_slice %2 {offsets = [0, 1, 0], sizes = [1, 16, 64], strides = [1, 1, 1]} : vector<1x18x64xf32> to vector<1x16x64xf32>
    %12 = vector.shape_cast %11 : vector<1x16x64xf32> to vector<16x64xf32>
    %c1 = arith.constant 1 : index
    %c0_8 = arith.constant 0 : index
    %c0_9 = arith.constant 0 : index
    %13 = vector.load %arg3[%c1, %c0_8, %c0_9] : memref<3x64x128xf32, #tpu.memory_space<vmem>>, vector<1x64x128xf32>
    %14 = vector.shape_cast %13 : vector<1x64x128xf32> to vector<64x128xf32>
    %cst_10 = arith.constant dense<0.000000e+00> : vector<16x128xf32>
    %15 = tpu.matmul %12, %14, %cst_10 {dimension_numbers = #tpu.dot_dimension_numbers<[1], [0], [0], [1], [0, 0, 1, 1], [], []>} : vector<16x64xf32>, vector<64x128xf32>, vector<16x128xf32> -> vector<16x128xf32>
    %16 = arith.addf %10, %15 : vector<16x128xf32>
    %17 = vector.extract_strided_slice %2 {offsets = [0, 2, 0], sizes = [1, 16, 64], strides = [1, 1, 1]} : vector<1x18x64xf32> to vector<1x16x64xf32>
    %18 = vector.shape_cast %17 : vector<1x16x64xf32> to vector<16x64xf32>
    %c2 = arith.constant 2 : index
    %c0_11 = arith.constant 0 : index
    %c0_12 = arith.constant 0 : index
    %19 = vector.load %arg3[%c2, %c0_11, %c0_12] : memref<3x64x128xf32, #tpu.memory_space<vmem>>, vector<1x64x128xf32>
    %20 = vector.shape_cast %19 : vector<1x64x128xf32> to vector<64x128xf32>
    %cst_13 = arith.constant dense<0.000000e+00> : vector<16x128xf32>
    %21 = tpu.matmul %18, %20, %cst_13 {dimension_numbers = #tpu.dot_dimension_numbers<[1], [0], [0], [1], [0, 0, 1, 1], [], []>} : vector<16x64xf32>, vector<64x128xf32>, vector<16x128xf32> -> vector<16x128xf32>
    %22 = arith.addf %16, %21 : vector<16x128xf32>
    %23 = vector.shape_cast %22 : vector<16x128xf32> to vector<1x16x128xf32>
    %cst_14 = arith.constant 0.000000e+00 : f32
    %24 = vector.broadcast %cst_14 : f32 to vector<1x1x128xf32>
    %25 = tpu.concatenate %24, %23, %24 in 1 : vector<1x1x128xf32>, vector<1x16x128xf32>, vector<1x1x128xf32> -> vector<1x18x128xf32>
    %c0_15 = arith.constant 0 : index
    %c0_16 = arith.constant 0 : index
    %26 = vector.load %arg6[%c0_15, %c0_16] : memref<1x128xf32, #tpu.memory_space<vmem>>, vector<1x128xf32>
    %27 = vector.extract_strided_slice %25 {offsets = [0, 0, 0], sizes = [1, 16, 128], strides = [1, 1, 1]} : vector<1x18x128xf32> to vector<1x16x128xf32>
    %28 = vector.shape_cast %27 : vector<1x16x128xf32> to vector<16x128xf32>
    %c0_17 = arith.constant 0 : index
    %c0_18 = arith.constant 0 : index
    %c0_19 = arith.constant 0 : index
    %29 = vector.load %arg5[%c0_17, %c0_18, %c0_19] : memref<3x128x128xf32, #tpu.memory_space<vmem>>, vector<1x128x128xf32>
    %30 = vector.shape_cast %29 : vector<1x128x128xf32> to vector<128x128xf32>
    %cst_20 = arith.constant dense<0.000000e+00> : vector<16x128xf32>
    %31 = tpu.matmul %28, %30, %cst_20 {dimension_numbers = #tpu.dot_dimension_numbers<[1], [0], [0], [1], [0, 0, 1, 1], [], []>} : vector<16x128xf32>, vector<128x128xf32>, vector<16x128xf32> -> vector<16x128xf32>
    %32 = vector.broadcast %26 : vector<1x128xf32> to vector<16x128xf32>
    %33 = arith.addf %32, %31 : vector<16x128xf32>
    %34 = vector.extract_strided_slice %25 {offsets = [0, 1, 0], sizes = [1, 16, 128], strides = [1, 1, 1]} : vector<1x18x128xf32> to vector<1x16x128xf32>
    %35 = vector.shape_cast %34 : vector<1x16x128xf32> to vector<16x128xf32>
    %c1_21 = arith.constant 1 : index
    %c0_22 = arith.constant 0 : index
    %c0_23 = arith.constant 0 : index
    %36 = vector.load %arg5[%c1_21, %c0_22, %c0_23] : memref<3x128x128xf32, #tpu.memory_space<vmem>>, vector<1x128x128xf32>
    %37 = vector.shape_cast %36 : vector<1x128x128xf32> to vector<128x128xf32>
    %cst_24 = arith.constant dense<0.000000e+00> : vector<16x128xf32>
    %38 = tpu.matmul %35, %37, %cst_24 {dimension_numbers = #tpu.dot_dimension_numbers<[1], [0], [0], [1], [0, 0, 1, 1], [], []>} : vector<16x128xf32>, vector<128x128xf32>, vector<16x128xf32> -> vector<16x128xf32>
    %39 = arith.addf %33, %38 : vector<16x128xf32>
    %40 = vector.extract_strided_slice %25 {offsets = [0, 2, 0], sizes = [1, 16, 128], strides = [1, 1, 1]} : vector<1x18x128xf32> to vector<1x16x128xf32>
    %41 = vector.shape_cast %40 : vector<1x16x128xf32> to vector<16x128xf32>
    %c2_25 = arith.constant 2 : index
    %c0_26 = arith.constant 0 : index
    %c0_27 = arith.constant 0 : index
    %42 = vector.load %arg5[%c2_25, %c0_26, %c0_27] : memref<3x128x128xf32, #tpu.memory_space<vmem>>, vector<1x128x128xf32>
    %43 = vector.shape_cast %42 : vector<1x128x128xf32> to vector<128x128xf32>
    %cst_28 = arith.constant dense<0.000000e+00> : vector<16x128xf32>
    %44 = tpu.matmul %41, %43, %cst_28 {dimension_numbers = #tpu.dot_dimension_numbers<[1], [0], [0], [1], [0, 0, 1, 1], [], []>} : vector<16x128xf32>, vector<128x128xf32>, vector<16x128xf32> -> vector<16x128xf32>
    %45 = arith.addf %39, %44 : vector<16x128xf32>
    %46 = vector.shape_cast %45 : vector<16x128xf32> to vector<1x16x128xf32>
    %cst_29 = arith.constant 0.000000e+00 : f32
    %47 = vector.broadcast %cst_29 : f32 to vector<1x16x128xf32>
    %48 = arith.maximumf %46, %47 : vector<1x16x128xf32>
    %cst_30 = arith.constant 0.000000e+00 : f32
    %49 = vector.broadcast %cst_30 : f32 to vector<1x1x128xf32>
    %50 = tpu.concatenate %49, %48, %49 in 1 : vector<1x1x128xf32>, vector<1x16x128xf32>, vector<1x1x128xf32> -> vector<1x18x128xf32>
    %c0_31 = arith.constant 0 : index
    %c0_32 = arith.constant 0 : index
    %51 = vector.load %arg8[%c0_31, %c0_32] : memref<1x128xf32, #tpu.memory_space<vmem>>, vector<1x128xf32>
    %52 = vector.extract_strided_slice %50 {offsets = [0, 0, 0], sizes = [1, 16, 128], strides = [1, 1, 1]} : vector<1x18x128xf32> to vector<1x16x128xf32>
    %53 = vector.shape_cast %52 : vector<1x16x128xf32> to vector<16x128xf32>
    %c0_33 = arith.constant 0 : index
    %c0_34 = arith.constant 0 : index
    %c0_35 = arith.constant 0 : index
    %54 = vector.load %arg7[%c0_33, %c0_34, %c0_35] : memref<3x128x128xf32, #tpu.memory_space<vmem>>, vector<1x128x128xf32>
    %55 = vector.shape_cast %54 : vector<1x128x128xf32> to vector<128x128xf32>
    %cst_36 = arith.constant dense<0.000000e+00> : vector<16x128xf32>
    %56 = tpu.matmul %53, %55, %cst_36 {dimension_numbers = #tpu.dot_dimension_numbers<[1], [0], [0], [1], [0, 0, 1, 1], [], []>} : vector<16x128xf32>, vector<128x128xf32>, vector<16x128xf32> -> vector<16x128xf32>
    %57 = vector.broadcast %51 : vector<1x128xf32> to vector<16x128xf32>
    %58 = arith.addf %57, %56 : vector<16x128xf32>
    %59 = vector.extract_strided_slice %50 {offsets = [0, 1, 0], sizes = [1, 16, 128], strides = [1, 1, 1]} : vector<1x18x128xf32> to vector<1x16x128xf32>
    %60 = vector.shape_cast %59 : vector<1x16x128xf32> to vector<16x128xf32>
    %c1_37 = arith.constant 1 : index
    %c0_38 = arith.constant 0 : index
    %c0_39 = arith.constant 0 : index
    %61 = vector.load %arg7[%c1_37, %c0_38, %c0_39] : memref<3x128x128xf32, #tpu.memory_space<vmem>>, vector<1x128x128xf32>
    %62 = vector.shape_cast %61 : vector<1x128x128xf32> to vector<128x128xf32>
    %cst_40 = arith.constant dense<0.000000e+00> : vector<16x128xf32>
    %63 = tpu.matmul %60, %62, %cst_40 {dimension_numbers = #tpu.dot_dimension_numbers<[1], [0], [0], [1], [0, 0, 1, 1], [], []>} : vector<16x128xf32>, vector<128x128xf32>, vector<16x128xf32> -> vector<16x128xf32>
    %64 = arith.addf %58, %63 : vector<16x128xf32>
    %65 = vector.extract_strided_slice %50 {offsets = [0, 2, 0], sizes = [1, 16, 128], strides = [1, 1, 1]} : vector<1x18x128xf32> to vector<1x16x128xf32>
    %66 = vector.shape_cast %65 : vector<1x16x128xf32> to vector<16x128xf32>
    %c2_41 = arith.constant 2 : index
    %c0_42 = arith.constant 0 : index
    %c0_43 = arith.constant 0 : index
    %67 = vector.load %arg7[%c2_41, %c0_42, %c0_43] : memref<3x128x128xf32, #tpu.memory_space<vmem>>, vector<1x128x128xf32>
    %68 = vector.shape_cast %67 : vector<1x128x128xf32> to vector<128x128xf32>
    %cst_44 = arith.constant dense<0.000000e+00> : vector<16x128xf32>
    %69 = tpu.matmul %66, %68, %cst_44 {dimension_numbers = #tpu.dot_dimension_numbers<[1], [0], [0], [1], [0, 0, 1, 1], [], []>} : vector<16x128xf32>, vector<128x128xf32>, vector<16x128xf32> -> vector<16x128xf32>
    %70 = arith.addf %64, %69 : vector<16x128xf32>
    %71 = vector.shape_cast %70 : vector<16x128xf32> to vector<1x16x128xf32>
    %72 = arith.addf %23, %71 : vector<1x16x128xf32>
    %c0_45 = arith.constant 0 : index
    %c0_46 = arith.constant 0 : index
    %c0_47 = arith.constant 0 : index
    %73 = vector.load %arg2[%c0_45, %c0_46, %c0_47] : memref<1x16x128xf32, #tpu.memory_space<vmem>>, vector<1x16x128xf32>
    %74 = arith.addf %72, %73 : vector<1x16x128xf32>
    %c0_48 = arith.constant 0 : index
    %c0_49 = arith.constant 0 : index
    %c0_50 = arith.constant 0 : index
    %75 = vector.load %arg9[%c0_48, %c0_49, %c0_50] : memref<1x16x128xf32, #tpu.memory_space<vmem>>, vector<1x16x128xf32>
    tpu.vector_store %arg9[%c0_48, %c0_49, %c0_50], %74 {strides = array<i32>} : memref<1x16x128xf32, #tpu.memory_space<vmem>>, vector<1x16x128xf32>,
    return
  }
  func.func @transform_0(%arg0: i32) -> (i32, i32, i32) {
    %c0_i32 = arith.constant 0 : i32
    %c0_i32_0 = arith.constant 0 : i32
    %c0_i32_1 = arith.constant 0 : i32
    return %arg0, %c0_i32, %c0_i32_0 : i32, i32, i32
  }
  func.func @transform_1(%arg0: i32) -> (i32, i32, i32) {
    %c0_i32 = arith.constant 0 : i32
    %c0_i32_0 = arith.constant 0 : i32
    %c0_i32_1 = arith.constant 0 : i32
    return %arg0, %c0_i32, %c0_i32_0 : i32, i32, i32
  }
  func.func @transform_2(%arg0: i32) -> (i32, i32, i32) {
    %c0_i32 = arith.constant 0 : i32
    %c0_i32_0 = arith.constant 0 : i32
    %c0_i32_1 = arith.constant 0 : i32
    %c0_i32_2 = arith.constant 0 : i32
    return %c0_i32, %c0_i32_0, %c0_i32_1 : i32, i32, i32
  }
  func.func @transform_3(%arg0: i32) -> (i32, i32) {
    %c0_i32 = arith.constant 0 : i32
    %c0_i32_0 = arith.constant 0 : i32
    %c0_i32_1 = arith.constant 0 : i32
    return %c0_i32, %c0_i32_0 : i32, i32
  }
  func.func @transform_4(%arg0: i32) -> (i32, i32, i32) {
    %c0_i32 = arith.constant 0 : i32
    %c0_i32_0 = arith.constant 0 : i32
    %c0_i32_1 = arith.constant 0 : i32
    %c0_i32_2 = arith.constant 0 : i32
    return %c0_i32, %c0_i32_0, %c0_i32_1 : i32, i32, i32
  }
  func.func @transform_5(%arg0: i32) -> (i32, i32) {
    %c0_i32 = arith.constant 0 : i32
    %c0_i32_0 = arith.constant 0 : i32
    %c0_i32_1 = arith.constant 0 : i32
    return %c0_i32, %c0_i32_0 : i32, i32
  }
  func.func @transform_6(%arg0: i32) -> (i32, i32, i32) {
    %c0_i32 = arith.constant 0 : i32
    %c0_i32_0 = arith.constant 0 : i32
    %c0_i32_1 = arith.constant 0 : i32
    %c0_i32_2 = arith.constant 0 : i32
    return %c0_i32, %c0_i32_0, %c0_i32_1 : i32, i32, i32
  }
  func.func @transform_7(%arg0: i32) -> (i32, i32) {
    %c0_i32 = arith.constant 0 : i32
    %c0_i32_0 = arith.constant 0 : i32
    %c0_i32_1 = arith.constant 0 : i32
    return %c0_i32, %c0_i32_0 : i32, i32
  }
  func.func @transform_8(%arg0: i32) -> (i32, i32, i32) {
    %c0_i32 = arith.constant 0 : i32
    %c0_i32_0 = arith.constant 0 : i32
    %c0_i32_1 = arith.constant 0 : i32
    return %arg0, %c0_i32, %c0_i32_0 : i32, i32, i32
  }
}

</mosaic_0001>

<bundles_post_ra>
// kernel: tile.18
= control target key start
LH: loop header
LB: loop body
LE: loop exit
PB: predicated region body
PF: predicated region fallthrough
CT: control target
= control target key end

     0   :  { %s28_s0 = inlined_call_operand.vmem [shape: f32[8], index: 0, kind: input, shape index: {}]   ;;  %s29_s1 = inlined_call_operand.vmem [shape: f32[16,8], index: 1, kind: output, shape index: {}]  }
   0x1   :  { %v4_v0 = vld [vmem:[%s28_s0] ss:$0 sm:$0xff] }
   0x2   :  { %5 = vst [vmem:[%s29_s1] sm:$0xff] %v4_v0 }
   0x3   :  { %8 = vst [vmem:[%s29_s1 + $0x8] sm:$0xff] %v4_v0 }

// kernel: tile.19
= control target key start
LH: loop header
LB: loop body
LE: loop exit
PB: predicated region body
PF: predicated region fallthrough
CT: control target
= control target key end

     0   :  { %s131_s10 = smov 120   ;;  %s132_s11 = smov 104   ;;  %vm3_vm0 = vcmask 64512   ;;  %vm9_vm1 = vcmask 1048512   ;;  %vm15_vm2 = vcmask 982912   ;;  %vm21_vm3 = vcmask 917312   ;;  %s207_s0 = inlined_call_operand.vmem [shape: f32[16,8], index: 0, kind: input, shape index: {}]   ;;  %s208_s1 = inlined_call_operand.vmem [shape: f32[1,128], index: 1, kind: output, shape index: {}]  }
   0x1   :  { %v101_v0 = vld [vmem:[%s207_s0 + $0xf] sm:$0x1]   ;;  %v103_v1 = vld [vmem:[%s207_s0 + $0xd] sm:$0x1]   ;;  %v105_v2 = vld [vmem:[%s207_s0 + $0xb] sm:$0x1]  }
   0x2   :  { %7 = vrot.lane.b32.xlu0 %v101_v0, %s131_s10  ;;  %19 = vrot.lane.b32.xlu1 %v103_v1, %s132_s11  ;;  %s133_s14 = smov 88   ;;  %v102_v3 = vld [vmem:[%s207_s0 + $0xe] sm:$0x1]   ;;  %v104_v4 = vld [vmem:[%s207_s0 + $0xc] sm:$0x1]   ;;  %s134_s19 = smov 112  }
   0x3   :  { %31 = vrot.lane.b32.xlu2 %v105_v2, %s133_s14  ;;  %s135_s20 = smov 96   ;;  %v106_v5 = vld [vmem:[%s207_s0 + $0xa] sm:$0x1]   ;;  %s136_s23 = smov 80   ;;  %v107_v6 = vld [vmem:[%s207_s0 + $0x9] sm:$0x1]  }
   0x4   :  { %v108_v7 = vld [vmem:[%s207_s0 + $0x8] sm:$0x1]   ;;  %s137_s28 = smov 72   ;;  %s138_s29 = smov 64   ;;  %v109_v8 = vld [vmem:[%s207_s0 + $0x7] sm:$0x1]  }
   0x5   :  { %s139_s3 = smov 56   ;;  %v110_v9 = vld [vmem:[%s207_s0 + $0x6] sm:$0x1]   ;;  %v111_v10 = vld [vmem:[%s207_s0 + $0x5] sm:$0x1]   ;;  %s140_s8 = smov 48  }
   0x6   :  { %s141_s9 = smov 40   ;;  %v112_v11 = vld [vmem:[%s207_s0 + $0x4] sm:$0x1]   ;;  %s142_s12 = smov 32   ;;  %v113_v12 = vld [vmem:[%s207_s0 + $0x3] sm:$0x1]  }
   0x7   :  { %v114_v13 = vld [vmem:[%s207_s0 + $0x2] sm:$0x1]   ;;  %s143_s17 = smov 24   ;;  %s144_s18 = smov 16   ;;  %v115_v14 = vld [vmem:[%s207_s0 + $0x1] sm:$0x1]  }
   0x8   :  { %s145_s21 = smov 8   ;;  %v2_v15 = vld [vmem:[%s207_s0] sm:$0x1]   ;;  %vm27_vm4 = vcmask 851712   ;;  %vm33_vm5 = vcmask 786112   ;;  %vm39_vm6 = vcmask 720512  }
   0x9   :  { %4 = vst.msk [vmem:[#allocation0] sm:$0x1] %vm3_vm0, %v2_v15   ;;  %vm45_vm7 = vcmask 654912   ;;  %vm51_vm8 = vcmask 589312   ;;  %vm57_vm9 = vcmask 523712   ;;  %vm63_vm10 = vcmask 458112  }
   0xa   :  { %13 = vrot.lane.b32.xlu0 %v102_v3, %s134_s19  ;;  %25 = vrot.lane.b32.xlu1 %v104_v4, %s135_s20  ;;  %vm69_vm11 = vcmask 392512   ;;  %vm75_vm12 = vcmask 326912   ;;  %vm81_vm13 = vcmask 261312   ;;  %vm87_vm14 = vcmask 195712  }
   0xb   :  { %37 = vrot.lane.b32.xlu2 %v106_v5, %s136_s23  ;;  %vm93_vm15 = vcmask 130112  }
  0x12   :  { %43 = vrot.lane.b32.xlu0 %v107_v6, %s137_s28  ;;  %49 = vrot.lane.b32.xlu1 %v108_v7, %s138_s29 }
  0x13   :  { %55 = vrot.lane.b32.xlu2 %v109_v8, %s139_s3 }
  0x1a   :  { %61 = vrot.lane.b32.xlu0 %v110_v9, %s140_s8  ;;  %67 = vrot.lane.b32.xlu1 %v111_v10, %s141_s9 }
  0x1b   :  { %73 = vrot.lane.b32.xlu2 %v112_v11, %s142_s12 }
  0x22   :  { %79 = vrot.lane.b32.xlu0 %v113_v12, %s143_s17  ;;  %85 = vrot.lane.b32.xlu1 %v114_v13, %s144_s18 }
  0x23   :  { %91 = vrot.lane.b32.xlu2 %v115_v14, %s145_s21 }
  0x5d   :  { %v32_v16 = vpop.permute.xlu2 %31  }
  0x65   :  { %v38_v17 = vpop.permute.xlu2 %37  }
  0x6d   :  { %v56_v18 = vpop.permute.xlu2 %55  }
  0x74   :  { %v8_v19 = vpop.permute.xlu0 %7   ;;  %v20_v20 = vpop.permute.xlu1 %19  }
  0x75   :  { %10 = vst.msk [vmem:[#allocation0] sm:$0x1] %vm9_vm1, %v8_v19   ;;  %v74_v21 = vpop.permute.xlu2 %73  }
  0x7c   :  { %v14_v22 = vpop.permute.xlu0 %13   ;;  %v26_v23 = vpop.permute.xlu1 %25  }
  0x7d   :  { %16 = vst.msk [vmem:[#allocation0] sm:$0x1] %vm15_vm2, %v14_v22   ;;  %v92_v24 = vpop.permute.xlu2 %91  }
  0x7e   :  { %22 = vst.msk [vmem:[#allocation0] sm:$0x1] %vm21_vm3, %v20_v20  }
  0x7f   :  { %28 = vst.msk [vmem:[#allocation0] sm:$0x1] %vm27_vm4, %v26_v23  }
  0x80   :  { %34 = vst.msk [vmem:[#allocation0] sm:$0x1] %vm33_vm5, %v32_v16  }
  0x81   :  { %40 = vst.msk [vmem:[#allocation0] sm:$0x1] %vm39_vm6, %v38_v17  }
  0x84   :  { %v44_v25 = vpop.permute.xlu0 %43   ;;  %v50_v26 = vpop.permute.xlu1 %49  }
  0x85   :  { %46 = vst.msk [vmem:[#allocation0] sm:$0x1] %vm45_vm7, %v44_v25  }
  0x86   :  { %52 = vst.msk [vmem:[#allocation0] sm:$0x1] %vm51_vm8, %v50_v26  }
  0x87   :  { %58 = vst.msk [vmem:[#allocation0] sm:$0x1] %vm57_vm9, %v56_v18  }
  0x8c   :  { %v62_v27 = vpop.permute.xlu0 %61   ;;  %v68_v28 = vpop.permute.xlu1 %67  }
  0x8d   :  { %64 = vst.msk [vmem:[#allocation0] sm:$0x1] %vm63_vm10, %v62_v27  }
  0x8e   :  { %70 = vst.msk [vmem:[#allocation0] sm:$0x1] %vm69_vm11, %v68_v28  }
  0x8f   :  { %76 = vst.msk [vmem:[#allocation0] sm:$0x1] %vm75_vm12, %v74_v21  }
  0x94   :  { %v80_v29 = vpop.permute.xlu0 %79   ;;  %v86_v30 = vpop.permute.xlu1 %85  }
  0x95   :  { %82 = vst.msk [vmem:[#allocation0] sm:$0x1] %vm81_vm13, %v80_v29  }
  0x96   :  { %88 = vst.msk [vmem:[#allocation0] sm:$0x1] %vm87_vm14, %v86_v30  }
  0x97   :  { %94 = vst.msk [vmem:[#allocation0] sm:$0x1] %vm93_vm15, %v92_v24  }
  0x9e   :  { %v97_v31 = vld [vmem:[#allocation0] sm:$0x1] }
  0x9f   :  { %100 = vst [vmem:[%s208_s1] sm:$0x1] %v97_v31 }

// kernel: conv_decoder_block.1
= control target key start
LH: loop header
LB: loop body
LE: loop exit
PB: predicated region body
PF: predicated region fallthrough
CT: control target
= control target key end

     0   :  { %s1027_s27 = smov 0   ;;  %s1465_s0 = inlined_call_operand.vmem [shape: f32[2,16,64], index: 0, kind: input, shape index: {}]   ;;  %s1466_s1 = inlined_call_operand.vmem [shape: f32[2,16,128], index: 1, kind: input, shape index: {}]   ;;  %s1467_s2 = inlined_call_operand.vmem [shape: f32[3,64,128], index: 2, kind: input, shape index: {}]   ;;  %s1468_s3 = inlined_call_operand.vmem [shape: f32[1,128], index: 3, kind: input, shape index: {}]   ;;  %s1469_s4 = inlined_call_operand.vmem [shape: f32[3,128,128], index: 4, kind: input, shape index: {}]   ;;  %s1470_s5 = inlined_call_operand.vmem [shape: f32[1,128], index: 5, kind: input, shape index: {}]   ;;  %s1471_s6 = inlined_call_operand.vmem [shape: f32[3,128,128], index: 6, kind: input, shape index: {}]   ;;  %s1472_s7 = inlined_call_operand.vmem [shape: f32[1,128], index: 7, kind: input, shape index: {}]   ;;  %s1473_s8 = inlined_call_operand.vmem [shape: f32[2,16,128], index: 8, kind: output, shape index: {}]  }
   0x1 LB: > { %s857_s28 = sadd.s32 4294967295, %s980_s27   ;;  %p861_p0 = scmp.ge.s32.totalorder %s980_s27, 1  ;;  %s980_s27 = sphi %s1027_s27, %s18_s27  }
   0x2   : > { %p272_p1 = scmp.lt.s32.totalorder %s980_s27, 3 }
   0x4   : > { %p273_p2 = pnand %p861_p0, %p272_p1 }
   0x5   : > { %p311_p3 = scmp.lt.s32.totalorder (!%p273_p2), %s857_s28, 1 }
   0x6   : > { %276 = sbr.rel (%p273_p2) target bundleno = 482 (0x1e2), region = 52 }
   0xb   : > { %v346_v0 = vld [vmem:[%s1467_s2 + $0x38] sm:$0xff]  ;;  %v345_v1 = vld [vmem:[%s1467_s2 + $0x30] sm:$0xff]  ;;  %v344_v2 = vld [vmem:[%s1467_s2 + $0x28] sm:$0xff]  ;;  %s1477_s28 = smov (!%p311_p3, %s857_s28), 1  ;;  %vm330_vm0 = vcmask 1040384   ;;  %vm435_vm1 = vcmask 1045504  }
   0xc   : > { %361 = vmatpush.msra.mxu1 %v346_v0  ;;  %v887_v3 = vld [vmem:[%s1467_s2 + $0xb8] sm:$0xff]  ;;  %v886_v4 = vld [vmem:[%s1467_s2 + $0xb0] sm:$0xff]  ;;  %v343_v5 = vld [vmem:[%s1467_s2 + $0x20] sm:$0xff]  ;;  %s1053_s19 = sshll.u32 %s1477_s28, 4  ;;  %vm347_vm2 = vcmask 523264   ;;  %vm391_vm3 = vcmask 1046528  }
   0xd   : > { %453 = vmatpush.msra.mxu2 %v887_v3  ;;  %v885_v6 = vld [vmem:[%s1467_s2 + $0xa8] sm:$0xff]  ;;  %v342_v7 = vld [vmem:[%s1467_s2 + $0x18] sm:$0xff]  ;;  %s315_s26 = scalar_lea.vmem %s1465_s0, %s1053_s19  ;;  %v884_v10 = vld [vmem:[%s1467_s2 + $0xa0] sm:$0xff]  ;;  %s320_s18 = scalar_lea.vmem %s1466_s1, %s1053_s19 }
   0xe   : > { %362 = vmatpush.msra.mxu1 %v345_v1  ;;  %v326_v8 = vld [vmem:[%s315_s26] sm:$0xff]  ;;  %v327_v9 = vld [vmem:[%s315_s26 + $0x8] sm:$0xff]  ;;  %v341_v13 = vld [vmem:[%s1467_s2 + $0x10] sm:$0xff]  ;;  %s325_s22 = scalar_lea.vmem %s1473_s8, %s1053_s19 }
   0xf   : > { %454 = vmatpush.msra.mxu2 %v886_v4  ;;  %v331_v11 = vrot.slane %v326_v8, 7  ;;  %v332_v12 = vrot.slane %v327_v9, 7  ;;  %v883_v14 = vld [vmem:[%s1467_s2 + $0x98] sm:$0xff]  ;;  %v340_v16 = vld [vmem:[%s1467_s2 + $0x8] sm:$0xff]  ;;  %v495_v18 = vld [vmem:[%s1469_s4 + $0x70] sm:$0xff] }
  0x10   : > { %363 = vmatpush.msra.mxu1 %v344_v2  ;;  %v496_v15 = vld [vmem:[%s1469_s4 + $0x78] sm:$0xff]  ;;  %v882_v20 = vld [vmem:[%s1467_s2 + $0x90] sm:$0xff]  ;;  %v494_v21 = vld [vmem:[%s1469_s4 + $0x68] sm:$0xff] }
  0x11   : > { %455 = vmatpush.msra.mxu2 %v885_v6  ;;  %v333_v17 = vsel %vm330_vm0, %v331_v11, %v332_v12  ;;  %v336_v19 = vsel %vm330_vm0, 0.0, %v331_v11  ;;  %497 = vmatpush.msra.mxu3 %v496_v15  ;;  %v339_v24 = vld [vmem:[%s1467_s2] sm:$0xff]  ;;  %v881_v25 = vld [vmem:[%s1467_s2 + $0x88] sm:$0xff]  ;;  %v877_v27 = vld [vmem:[%s1467_s2 + $0x78] sm:$0xff]  ;;  %v337_v31 = vsel %vm330_vm0, %v332_v12, 0.0 }
  0x12   : > { %364 = vmatpush.msra.mxu1 %v343_v5  ;;  %v436_v22 = vrot.slane %v336_v19, 2  ;;  %v437_v23 = vrot.slane %v333_v17, 2  ;;  %v493_v26 = vld [vmem:[%s1469_s4 + $0x60] sm:$0xff]  ;;  %v876_v30 = vld [vmem:[%s1467_s2 + $0x70] sm:$0xff]  ;;  %v875_v32 = vld [vmem:[%s1467_s2 + $0x68] sm:$0xff]  ;;  %v439_v33 = vrot.slane %v337_v31, 2 }
  0x13   : > { %456 = vmatpush.msra.mxu2 %v884_v10  ;;  %498 = vmatpush.msra.mxu3 %v495_v18  ;;  %v880_v28 = vld [vmem:[%s1467_s2 + $0x80] sm:$0xff]  ;;  %v873_v35 = vld [vmem:[%s1467_s2 + $0x58] sm:$0xff]  ;;  %v872_v37 = vld [vmem:[%s1467_s2 + $0x50] sm:$0xff]  ;;  %v392_v38 = vrot.slane %v336_v19, 1  ;;  %v393_v39 = vrot.slane %v333_v17, 1  ;;  %v395_v43 = vrot.slane %v337_v31, 1 }
  0x14   : > { %365 = vmatpush.msra.mxu1 %v342_v7  ;;  %v438_v29 = vsel %vm435_vm1, %v436_v22, %v437_v23  ;;  %v874_v34 = vld [vmem:[%s1467_s2 + $0x60] sm:$0xff]  ;;  %v440_v36 = vsel %vm435_vm1, %v437_v23, %v439_v33  ;;  %v871_v40 = vld [vmem:[%s1467_s2 + $0x48] sm:$0xff]  ;;  %v492_v45 = vld [vmem:[%s1469_s4 + $0x58] sm:$0xff] }
  0x15   : > { %457 = vmatpush.msra.mxu2 %v883_v14  ;;  %499 = vmatpush.msra.mxu3 %v494_v21  ;;  %v870_v41 = vld [vmem:[%s1467_s2 + $0x40] sm:$0xff]  ;;  %v394_v42 = vsel %vm391_vm3, %v392_v38, %v393_v39  ;;  %v396_v44 = vsel %vm391_vm3, %v393_v39, %v395_v43  ;;  %v491_v46 = vld [vmem:[%s1469_s4 + $0x50] sm:$0xff]  ;;  %v490_v47 = vld [vmem:[%s1469_s4 + $0x48] sm:$0xff] }
  0x16   : > { %366 = vmatpush.msra.mxu1 %v341_v13  ;;  %v907_v48 = vld [vmem:[%s1469_s4 + $0xf8] sm:$0xff]  ;;  %v906_v50 = vld [vmem:[%s1469_s4 + $0xf0] sm:$0xff]  ;;  %v489_v51 = vld [vmem:[%s1469_s4 + $0x40] sm:$0xff] }
  0x17   : > { %458 = vmatpush.msra.mxu2 %v882_v20  ;;  %500 = vmatpush.msra.mxu3 %v493_v26  ;;  %v923_v49 = vld [vmem:[%s1469_s4 + $0x178] sm:$0xff]  ;;  %v922_v52 = vld [vmem:[%s1469_s4 + $0x170] sm:$0xff]  ;;  %v905_v54 = vld [vmem:[%s1469_s4 + $0xe8] sm:$0xff] }
  0x18   : > { %367 = vmatpush.msra.mxu1 %v340_v16  ;;  %551 = vmatpush.msra.mxu0 %v907_v48  ;;  %v488_v53 = vld [vmem:[%s1469_s4 + $0x38] sm:$0xff]  ;;  %v921_v55 = vld [vmem:[%s1469_s4 + $0x168] sm:$0xff]  ;;  %v487_v56 = vld [vmem:[%s1469_s4 + $0x30] sm:$0xff] }
  0x19   : > { %459 = vmatpush.msra.mxu2 %v881_v25  ;;  %501 = vmatpush.msra.mxu3 %v492_v45  ;;  %v904_v57 = vld [vmem:[%s1469_s4 + $0xe0] sm:$0xff]  ;;  %v486_v59 = vld [vmem:[%s1469_s4 + $0x28] sm:$0xff]  ;;  %v903_v60 = vld [vmem:[%s1469_s4 + $0xd8] sm:$0xff] }
  0x1a   : > { %368 = vmatpush.msra.mxu1 %v339_v24  ;;  %552 = vmatpush.msra.mxu0 %v906_v50  ;;  %v920_v58 = vld [vmem:[%s1469_s4 + $0x160] sm:$0xff]  ;;  %v919_v61 = vld [vmem:[%s1469_s4 + $0x158] sm:$0xff]  ;;  %v902_v63 = vld [vmem:[%s1469_s4 + $0xd0] sm:$0xff] }
  0x1b   : > { %868 = vmatmul.msk.f32.vlgmr.msra.gmra.mxu1 %vm347_vm2, %v336_v19  ;;  %460 = vmatpush.msra.mxu2 %v880_v28  ;;  %v485_v62 = vld [vmem:[%s1469_s4 + $0x20] sm:$0xff]  ;;  %v918_v0 = vld [vmem:[%s1469_s4 + $0x150] sm:$0xff]  ;;  %v484_v1 = vld [vmem:[%s1469_s4 + $0x18] sm:$0xff] }
  0x1c   : > { %409 = vmatpush.msrb.mxu1 %v877_v27  ;;  %888 = vmatmul.msk.f32.vlgmr.msra.gmra.mxu2 %vm347_vm2, %v438_v29  ;;  %v901_v2 = vld [vmem:[%s1469_s4 + $0xc8] sm:$0xff]  ;;  %v483_v4 = vld [vmem:[%s1469_s4 + $0x10] sm:$0xff]  ;;  %v900_v5 = vld [vmem:[%s1469_s4 + $0xc0] sm:$0xff] }
  0x1d   : > { %502 = vmatpush.msra.mxu3 %v491_v46  ;;  %553 = vmatpush.msra.mxu0 %v905_v54  ;;  %v917_v3 = vld [vmem:[%s1469_s4 + $0x148] sm:$0xff]  ;;  %v916_v6 = vld [vmem:[%s1469_s4 + $0x140] sm:$0xff]  ;;  %v899_v8 = vld [vmem:[%s1469_s4 + $0xb8] sm:$0xff] }
  0x1e   : > { %410 = vmatpush.msrb.mxu1 %v876_v30  ;;  %v482_v7 = vld [vmem:[%s1469_s4 + $0x8] sm:$0xff]  ;;  %v915_v9 = vld [vmem:[%s1469_s4 + $0x138] sm:$0xff]  ;;  %v481_v10 = vld [vmem:[%s1469_s4] sm:$0xff] }
  0x1f   : > { %503 = vmatpush.msra.mxu3 %v490_v47  ;;  %554 = vmatpush.msra.mxu0 %v904_v57  ;;  %v898_v11 = vld [vmem:[%s1469_s4 + $0xb0] sm:$0xff]  ;;  %v897_v13 = vld [vmem:[%s1469_s4 + $0xa8] sm:$0xff]  ;;  %v896_v15 = vld [vmem:[%s1469_s4 + $0xa0] sm:$0xff] }
  0x20   : > { %411 = vmatpush.msrb.mxu1 %v875_v32  ;;  %v914_v12 = vld [vmem:[%s1469_s4 + $0x130] sm:$0xff]  ;;  %v913_v14 = vld [vmem:[%s1469_s4 + $0x128] sm:$0xff]  ;;  %v912_v16 = vld [vmem:[%s1469_s4 + $0x120] sm:$0xff] }
  0x21   : > { %504 = vmatpush.msra.mxu3 %v489_v51  ;;  %555 = vmatpush.msra.mxu0 %v903_v60  ;;  %v911_v18 = vld [vmem:[%s1469_s4 + $0x118] sm:$0xff]  ;;  %v894_v19 = vld [vmem:[%s1469_s4 + $0x90] sm:$0xff]  ;;  %v893_v21 = vld [vmem:[%s1469_s4 + $0x88] sm:$0xff] }
  0x22   : > { %412 = vmatpush.msrb.mxu1 %v874_v34  ;;  %v910_v20 = vld [vmem:[%s1469_s4 + $0x110] sm:$0xff]  ;;  %v909_v22 = vld [vmem:[%s1469_s4 + $0x108] sm:$0xff]  ;;  %v892_v24 = vld [vmem:[%s1469_s4 + $0x80] sm:$0xff] }
  0x23   : > { %869 = vmatmul.msk.f32.gmra.mxu1 %vm347_vm2, %v333_v17  ;;  %505 = vmatpush.msra.mxu3 %v488_v53  ;;  %v895_v17 = vld [vmem:[%s1469_s4 + $0x98] sm:$0xff]  ;;  %v908_v25 = vld [vmem:[%s1469_s4 + $0x100] sm:$0xff]  ;;  %v652_v29 = vld [vmem:[%s1471_s6 + $0x70] sm:$0xff] }
  0x24   : > { %413 = vmatpush.msrb.mxu1 %v873_v35  ;;  %889 = vmatmul.msk.f32.gmra.mxu2 %vm347_vm2, %v440_v36  ;;  %v971_v27 = vld [vmem:[%s1468_s3] ss:$0 sm:$0xff]  ;;  %v653_v28 = vld [vmem:[%s1471_s6 + $0x78] sm:$0xff]  ;;  %v651_v30 = vld [vmem:[%s1471_s6 + $0x68] sm:$0xff] }
  0x25   : > { %506 = vmatpush.msra.mxu3 %v487_v56  ;;  %556 = vmatpush.msra.mxu0 %v902_v63  ;;  %v941_v31 = vld [vmem:[%s1471_s6 + $0xf8] sm:$0xff]  ;;  %v940_v34 = vld [vmem:[%s1471_s6 + $0xf0] sm:$0xff]  ;;  %vm1306_vm4 = vmneg %vm330_vm0 }
  0x26   : > { %414 = vmatpush.msrb.mxu1 %v872_v37  ;;  %654 = vmatpush.msrb.mxu2 %v653_v28  ;;  %v957_v32 = vld [vmem:[%s1471_s6 + $0x178] sm:$0xff]  ;;  %v956_v35 = vld [vmem:[%s1471_s6 + $0x170] sm:$0xff]  ;;  %v650_v37 = vld [vmem:[%s1471_s6 + $0x60] sm:$0xff] }
  0x27   : > { %507 = vmatpush.msra.mxu3 %v486_v59  ;;  %557 = vmatpush.msra.mxu0 %v901_v2  ;;  %v647_v45 = vld [vmem:[%s1471_s6 + $0x48] sm:$0xff]  ;;  %v646_v47 = vld [vmem:[%s1471_s6 + $0x40] sm:$0xff]  ;;  %v645_v2 = vld [vmem:[%s1471_s6 + $0x38] sm:$0xff] }
  0x28   : > { %415 = vmatpush.msrb.mxu1 %v871_v40  ;;  %655 = vmatpush.msrb.mxu2 %v652_v29  ;;  %v649_v40 = vld [vmem:[%s1471_s6 + $0x58] sm:$0xff]  ;;  %v930_v28 = vld [vmem:[%s1471_s6 + $0xa0] sm:$0xff] }
  0x29   : > { %508 = vmatpush.msra.mxu3 %v485_v62  ;;  %558 = vmatpush.msra.mxu0 %v900_v5  ;;  %v644_v5 = vld [vmem:[%s1471_s6 + $0x30] sm:$0xff]  ;;  %v946_v29 = vld [vmem:[%s1471_s6 + $0x120] sm:$0xff] }
  0x2a   : > { %416 = vmatpush.msrb.mxu1 %v870_v41  ;;  %656 = vmatpush.msrb.mxu2 %v651_v30  ;;  %v929_v30 = vld [vmem:[%s1471_s6 + $0x98] sm:$0xff] }
  0x2b   : > { %878 = vmatmul.msk.f32.vlgmr.msrb.gmra.mxu1 %vm347_vm2, %v394_v42  ;;  %509 = vmatpush.msra.mxu3 %v484_v1  ;;  %v648_v42 = vld [vmem:[%s1471_s6 + $0x50] sm:$0xff] }
  0x2c   : > { %600 = vmatpush.msra.mxu1 %v923_v49  ;;  %559 = vmatpush.msra.mxu0 %v899_v8  ;;  %v643_v8 = vld [vmem:[%s1471_s6 + $0x28] sm:$0xff] }
  0x2d   : > { %510 = vmatpush.msra.mxu3 %v483_v4  ;;  %657 = vmatpush.msrb.mxu2 %v650_v37  ;;  %v955_v4 = vld [vmem:[%s1471_s6 + $0x168] sm:$0xff]  ;;  %v942_v37 = vld [vmem:[%s1471_s6 + $0x100] sm:$0xff] }
  0x2e   : > { %601 = vmatpush.msra.mxu1 %v922_v52  ;;  %560 = vmatpush.msra.mxu0 %v898_v11  ;;  %v642_v11 = vld [vmem:[%s1471_s6 + $0x20] sm:$0xff] }
  0x2f   : > { %511 = vmatpush.msra.mxu3 %v482_v7  ;;  %658 = vmatpush.msrb.mxu2 %v649_v40  ;;  %v954_v7 = vld [vmem:[%s1471_s6 + $0x160] sm:$0xff] }
  0x30   : > { %602 = vmatpush.msra.mxu1 %v921_v55  ;;  %561 = vmatpush.msra.mxu0 %v897_v13  ;;  %v952_v13 = vld [vmem:[%s1471_s6 + $0x150] sm:$0xff] }
  0x31   : > { %512 = vmatpush.msra.mxu3 %v481_v10  ;;  %659 = vmatpush.msrb.mxu2 %v648_v42  ;;  %v953_v10 = vld [vmem:[%s1471_s6 + $0x158] sm:$0xff] }
  0x32   : > { %603 = vmatpush.msra.mxu1 %v920_v58  ;;  %562 = vmatpush.msra.mxu0 %v896_v15  ;;  %v935_v15 = vld [vmem:[%s1471_s6 + $0xc8] sm:$0xff] }
  0x33   : > { %879 = vmatmul.msk.f32.gmra.mxu1 %vm347_vm2, %v396_v44  ;;  %708 = vmatpush.msrb.mxu3 %v941_v31  ;;  %v945_v31 = vld [vmem:[%s1471_s6 + $0x118] sm:$0xff] }
  0x34   : > { %604 = vmatpush.msra.mxu1 %v919_v61  ;;  %563 = vmatpush.msra.mxu0 %v895_v17  ;;  %v640_v17 = vld [vmem:[%s1471_s6 + $0x10] sm:$0xff] }
  0x35   : > { %709 = vmatpush.msrb.mxu3 %v940_v34  ;;  %660 = vmatpush.msrb.mxu2 %v647_v45  ;;  %v927_v34 = vld [vmem:[%s1471_s6 + $0x88] sm:$0xff] }
  0x36   : > { %605 = vmatpush.msra.mxu1 %v918_v0  ;;  %564 = vmatpush.msra.mxu0 %v894_v19  ;;  %v950_v19 = vld [vmem:[%s1471_s6 + $0x140] sm:$0xff] }
  0x37   : > { %661 = vmatpush.msrb.mxu2 %v646_v47 }
  0x38   : > { %606 = vmatpush.msra.mxu1 %v917_v3  ;;  %565 = vmatpush.msra.mxu0 %v893_v21  ;;  %v939_v3 = vld [vmem:[%s1471_s6 + $0xe8] sm:$0xff]  ;;  %v933_v21 = vld [vmem:[%s1471_s6 + $0xb8] sm:$0xff] }
  0x39   : > { %662 = vmatpush.msrb.mxu2 %v645_v2  ;;  %710 = vmatpush.msrb.mxu3 %v939_v3 }
  0x3a   : > { %607 = vmatpush.msra.mxu1 %v916_v6  ;;  %566 = vmatpush.msra.mxu0 %v892_v24  ;;  %v938_v6 = vld [vmem:[%s1471_s6 + $0xe0] sm:$0xff]  ;;  %v932_v24 = vld [vmem:[%s1471_s6 + $0xb0] sm:$0xff] }
  0x3b   : > { %663 = vmatpush.msrb.mxu2 %v644_v5  ;;  %711 = vmatpush.msrb.mxu3 %v938_v6 }
  0x3c   : > { %608 = vmatpush.msra.mxu1 %v915_v9  ;;  %757 = vmatpush.msrb.mxu0 %v957_v32  ;;  %v937_v9 = vld [vmem:[%s1471_s6 + $0xd8] sm:$0xff]  ;;  %v928_v32 = vld [vmem:[%s1471_s6 + $0x90] sm:$0xff] }
  0x3d   : > { %664 = vmatpush.msrb.mxu2 %v643_v8  ;;  %712 = vmatpush.msrb.mxu3 %v937_v9 }
  0x3e   : > { %609 = vmatpush.msra.mxu1 %v914_v12  ;;  %758 = vmatpush.msrb.mxu0 %v956_v35  ;;  %v936_v12 = vld [vmem:[%s1471_s6 + $0xd0] sm:$0xff]  ;;  %v943_v35 = vld [vmem:[%s1471_s6 + $0x108] sm:$0xff] }
  0x3f   : > { %665 = vmatpush.msrb.mxu2 %v642_v11  ;;  %713 = vmatpush.msrb.mxu3 %v936_v12 }
  0x40   : > { %610 = vmatpush.msra.mxu1 %v913_v14  ;;  %759 = vmatpush.msrb.mxu0 %v955_v4  ;;  %v641_v14 = vld [vmem:[%s1471_s6 + $0x18] sm:$0xff] }
  0x41   : > { %666 = vmatpush.msrb.mxu2 %v641_v14  ;;  %714 = vmatpush.msrb.mxu3 %v935_v15  ;;  %v784_v14 = vld [vmem:[%s320_s18] sm:$0xff] }
  0x42   : > { %611 = vmatpush.msra.mxu1 %v912_v16  ;;  %760 = vmatpush.msrb.mxu0 %v954_v7  ;;  %v951_v16 = vld [vmem:[%s1471_s6 + $0x148] sm:$0xff]  ;;  %v973_v7 = vld [vmem:[%s1472_s7] ss:$0 sm:$0xff] }
  0x43   : > { %667 = vmatpush.msrb.mxu2 %v640_v17 }
  0x44   : > { %612 = vmatpush.msra.mxu1 %v911_v18  ;;  %761 = vmatpush.msrb.mxu0 %v953_v10  ;;  %v934_v18 = vld [vmem:[%s1471_s6 + $0xc0] sm:$0xff] }
  0x45   : > { %715 = vmatpush.msrb.mxu3 %v934_v18 }
  0x46   : > { %613 = vmatpush.msra.mxu1 %v910_v20  ;;  %762 = vmatpush.msrb.mxu0 %v952_v13  ;;  %v639_v20 = vld [vmem:[%s1471_s6 + $0x8] sm:$0xff] }
  0x47   : > { %668 = vmatpush.msrb.mxu2 %v639_v20  ;;  %716 = vmatpush.msrb.mxu3 %v933_v21 }
  0x48   : > { %614 = vmatpush.msra.mxu1 %v909_v22  ;;  %763 = vmatpush.msrb.mxu0 %v951_v16  ;;  %v949_v22 = vld [vmem:[%s1471_s6 + $0x138] sm:$0xff] }
  0x49   : > { %717 = vmatpush.msrb.mxu3 %v932_v24 }
  0x4a   : > { %615 = vmatpush.msra.mxu1 %v908_v25  ;;  %764 = vmatpush.msrb.mxu0 %v950_v19  ;;  %v948_v25 = vld [vmem:[%s1471_s6 + $0x130] sm:$0xff] }
  0x4c   : > { %765 = vmatpush.msrb.mxu0 %v949_v22  ;;  %v785_v22 = vld [vmem:[%s320_s18 + $0x8] sm:$0xff] }
  0x4e   : > { %766 = vmatpush.msrb.mxu0 %v948_v25 }
  0x98   : > { %v370_v23 = vpop.f32.mrf.mxu1 }
  0x99   : > { %v379_v36 = vadd.f32 %v971_v27, %v370_v23  ;;  %v638_v23 = vld [vmem:[%s1471_s6] sm:$0xff] }
  0x9a   : > { %669 = vmatpush.msrb.mxu2 %v638_v23 }
  0x9f   : > { %v462_v33 = vpop.f32.mrf.mxu2 }
  0xa0   : > { %v373_v26 = vpop.f32.mrf.mxu1 }
  0xa1   : > { %v380_v46 = vadd.f32 %v971_v27, %v373_v26  ;;  %v931_v26 = vld [vmem:[%s1471_s6 + $0xa8] sm:$0xff] }
  0xa2   : > { %v947_v27 = vld [vmem:[%s1471_s6 + $0x128] sm:$0xff]  ;;  %718 = vmatpush.msrb.mxu3 %v931_v26 }
  0xa3   : > { %767 = vmatpush.msrb.mxu0 %v947_v27 }
  0xa4   : > { %719 = vmatpush.msrb.mxu3 %v930_v28 }
  0xa5   : > { %768 = vmatpush.msrb.mxu0 %v946_v29 }
  0xa6   : > { %720 = vmatpush.msrb.mxu3 %v929_v30 }
  0xa7   : > { %v465_v49 = vpop.f32.mrf.mxu2  ;;  %769 = vmatpush.msrb.mxu0 %v945_v31 }
  0xa8   : > { %v418_v38 = vpop.f32.mrf.mxu1  ;;  %721 = vmatpush.msrb.mxu3 %v928_v32 }
  0xa9   : > { %v424_v39 = vadd.f32 %v418_v38, %v379_v36  ;;  %v926_v36 = vld [vmem:[%s1471_s6 + $0x80] sm:$0xff] }
  0xaa   : > { %722 = vmatpush.msrb.mxu3 %v927_v34 }
  0xab   : > { %v1300_v41 = vadd.f32 %v462_v33, %v424_v39  ;;  %v944_v33 = vld [vmem:[%s1471_s6 + $0x110] sm:$0xff]  ;;  %v972_v39 = vld [vmem:[%s1470_s5] ss:$0 sm:$0xff] }
  0xac   : > { %770 = vmatpush.msrb.mxu0 %v944_v33  ;;  %723 = vmatpush.msrb.mxu3 %v926_v36 }
  0xad   : > { %v472_v44 = vrot.slane %v1300_v41, 7 }
  0xae   : > { %771 = vmatpush.msrb.mxu0 %v943_v35 }
  0xaf   : > { %891 = vmatmul.msk.f32.vlgmr.msra.gmra.mxu3 %vm1306_vm4, %v472_v44  ;;  %v478_v53 = vsel %vm330_vm0, 0.0, %v472_v44 }
  0xb0   : > { %v421_v48 = vpop.f32.mrf.mxu1  ;;  %v544_v57 = vrot.slane %v478_v53, 1  ;;  %v593_v58 = vrot.slane %v478_v53, 2  ;;  %772 = vmatpush.msrb.mxu0 %v942_v37 }
  0xb1   : > { %v425_v50 = vadd.f32 %v421_v48, %v380_v46 }
  0xb3   : > { %v1319_v51 = vadd.f32 %v465_v49, %v425_v50 }
  0xb5   : > { %v473_v52 = vrot.slane %v1319_v51, 7 }
  0xb7   : > { %v474_v54 = vsel %vm330_vm0, %v472_v44, %v473_v52  ;;  %v479_v61 = vsel %vm330_vm0, %v473_v52, 0.0 }
  0xb8   : > { %516 = vmatmul.f32.gmra.mxu3 %v474_v54  ;;  %v545_v55 = vrot.slane %v474_v54, 1  ;;  %v594_v56 = vrot.slane %v474_v54, 2  ;;  %v547_v62 = vrot.slane %v479_v61, 1  ;;  %v596_v63 = vrot.slane %v479_v61, 2 }
  0xba   : > { %v546_v59 = vsel %vm391_vm3, %v544_v57, %v545_v55  ;;  %v595_v60 = vsel %vm435_vm1, %v593_v58, %v594_v56  ;;  %v548_v0 = vsel %vm391_vm3, %v545_v55, %v547_v62  ;;  %v597_v1 = vsel %vm435_vm1, %v594_v56, %v596_v63 }
  0xbb   : > { %567 = vmatmul.f32.vlgmr.msra.gmra.mxu0 %v546_v59  ;;  %616 = vmatmul.f32.vlgmr.msra.gmra.mxu1 %v595_v60 }
  0xc3   : > { %570 = vmatmul.f32.gmra.mxu0 %v548_v0  ;;  %619 = vmatmul.f32.gmra.mxu1 %v597_v1 }
 0x132   : > { %v514_v38 = vpop.f32.mrf.mxu3 }
 0x133   : > { %v523_v40 = vadd.f32 %v972_v39, %v514_v38 }
 0x138   : > { %v568_v42 = vpop.f32.mrf.mxu0  ;;  %v617_v44 = vpop.f32.mrf.mxu1 }
 0x139   : > { %v574_v45 = vadd.f32 %v568_v42, %v523_v40 }
 0x13b   : > { %v623_v46 = vadd.f32 %v617_v44, %v574_v45  ;;  %v517_v47 = vpop.f32.mrf.mxu3 }
 0x13c   : > { %v524_v50 = vadd.f32 %v972_v39, %v517_v47 }
 0x13d   : > { %v625_v48 = vmax.f32 %v623_v46, 0.0 }
 0x13f   : > { %v629_v49 = vrot.slane %v625_v48, 7 }
 0x140   : > { %v571_v52 = vpop.f32.mrf.mxu0  ;;  %v620_v54 = vpop.f32.mrf.mxu1 }
 0x141   : > { %v575_v53 = vadd.f32 %v571_v52, %v524_v50  ;;  %925 = vmatmul.msk.f32.vlgmr.msrb.gmra.mxu2 %vm1306_vm4, %v629_v49  ;;  %v635_v57 = vsel %vm330_vm0, 0.0, %v629_v49 }
 0x142   : > { %v701_v62 = vrot.slane %v635_v57, 1  ;;  %v750_v63 = vrot.slane %v635_v57, 2 }
 0x143   : > { %v624_v55 = vadd.f32 %v620_v54, %v575_v53 }
 0x145   : > { %v626_v56 = vmax.f32 %v624_v55, 0.0 }
 0x147   : > { %v630_v58 = vrot.slane %v626_v56, 7 }
 0x149   : > { %v631_v59 = vsel %vm330_vm0, %v629_v49, %v630_v58  ;;  %v636_v43 = vsel %vm330_vm0, %v630_v58, 0.0 }
 0x14a   : > { %673 = vmatmul.f32.gmra.mxu2 %v631_v59  ;;  %v702_v60 = vrot.slane %v631_v59, 1  ;;  %v751_v61 = vrot.slane %v631_v59, 2  ;;  %v704_v2 = vrot.slane %v636_v43, 1  ;;  %v753_v3 = vrot.slane %v636_v43, 2 }
 0x14c   : > { %v703_v0 = vsel %vm391_vm3, %v701_v62, %v702_v60  ;;  %v752_v1 = vsel %vm435_vm1, %v750_v63, %v751_v61  ;;  %v705_v4 = vsel %vm391_vm3, %v702_v60, %v704_v2  ;;  %v754_v5 = vsel %vm435_vm1, %v751_v61, %v753_v3 }
 0x14d   : > { %724 = vmatmul.f32.vlgmr.msrb.gmra.mxu3 %v703_v0  ;;  %773 = vmatmul.f32.vlgmr.msrb.gmra.mxu0 %v752_v1 }
 0x155   : > { %727 = vmatmul.f32.gmra.mxu3 %v705_v4  ;;  %776 = vmatmul.f32.gmra.mxu0 %v754_v5 }
 0x1c4   : > { %v671_v6 = vpop.f32.mrf.mxu2 }
 0x1c5   : > { %v680_v8 = vadd.f32 %v973_v7, %v671_v6 }
 0x1ca   : > { %v774_v9 = vpop.f32.mrf.mxu0 }
 0x1cd   : > { %v674_v13 = vpop.f32.mrf.mxu2 }
 0x1ce   : > { %v681_v16 = vadd.f32 %v973_v7, %v674_v13 }
 0x1d0   : > { %v725_v10 = vpop.f32.mrf.mxu3 }
 0x1d1   : > { %v731_v11 = vadd.f32 %v725_v10, %v680_v8 }
 0x1d2   : > { %v777_v20 = vpop.f32.mrf.mxu0 }
 0x1d3   : > { %v780_v12 = vadd.f32 %v774_v9, %v731_v11 }
 0x1d5   : > { %v782_v15 = vadd.f32 %v780_v12, %v1300_v41 }
 0x1d7   : > { %v786_v17 = vadd.f32 %v784_v14, %v782_v15 }
 0x1d8   : > { %v728_v18 = vpop.f32.mrf.mxu3 }
 0x1d9   : > { %788 = vst [vmem:[%s325_s22] sm:$0xff] %v786_v17  ;;  %v732_v19 = vadd.f32 %v728_v18, %v681_v16 }
 0x1db   : > { %v781_v21 = vadd.f32 %v777_v20, %v732_v19 }
 0x1dd   : > { %v783_v23 = vadd.f32 %v781_v21, %v1319_v51 }
 0x1df   : > { %v787_v24 = vadd.f32 %v785_v22, %v783_v23 }
 0x1e1   : > { %789 = vst [vmem:[%s325_s22 + $0x8] sm:$0xff] %v787_v24 }
 0x1e2 PF: > { %s18_s27 = sadd.s32 1, %s980_s27  }
 0x1e3   : > { %p15_p4 = scmp.ge.s32.totalorder %s18_s27, 4  }
 0x1e5   :  { %17 = sbr.rel (!%p15_p4) target bundleno = 1 (0x1), region = 91 }

</bundles_post_ra>
